<compile_context>
chip_gen: v7x
topology: tpu7x:2x2x1
jax: 0.10.0
libtpu: 0.0.40
codegen_flags: <defaults>
</compile_context>

<pallas_src>
import functools

import jax
import jax.numpy as jnp
import numpy as np
from jax import lax
from jax.experimental import pallas as pl
from jax.experimental.pallas import tpu as pltpu


def _basic_block_kernel(H, W, C, eps,
                        x_ref, w1_ref, w2_ref, alpha_ref, col_ref, o_ref,
                        p1_ref, p2_ref):
    """One batch element.

    x_ref:     (C, H*W)    channel-major image slab (lane axis = H*W)
    w1_ref:    (2C, 9*C)   conv1 weights, column index = (dy*3+dx)*C + cin
    w2_ref:    (C, 9*2C)   conv2 weights
    alpha_ref: (2C, 1)     PReLU per-channel slopes
    col_ref:   (1, H*W)    w-coordinate of each flattened pixel (int32)
    o_ref:     (C, H*W)
    p1_ref:    (9*C, H*W)  im2col patches for conv1 (VMEM scratch)
    p2_ref:    (9*2C, H*W) im2col patches for conv2 (VMEM scratch)
    """
    HW = H * W
    C2 = 2 * C
    f32 = jnp.float32

    x = x_ref[...].astype(f32)                              # (C, HW)

    # Border masks (built once; row masks need no integer division).
    idx = lax.broadcasted_iota(jnp.int32, (1, HW), 1)       # flat spatial index h*W + w
    col = col_ref[...]                                      # w coordinate
    row_ok = {-1: idx >= W, 0: None, 1: idx < (H - 1) * W}
    col_ok = {-1: col >= 1, 0: None, 1: col <= W - 2}

    def im2col(src, cin, patches_ref):
        # patches[t*cin:(t+1)*cin, i] = src[:, i + oy*W + ox] when the 3x3 tap lies
        # inside the image ("SAME" zero padding), else 0; tap t = (oy+1)*3 + (ox+1).
        # roll(src, (-s) % HW)[i] = src[(i + s) % HW]; wrapped positions are masked.
        t = 0
        for oy in (-1, 0, 1):
            for ox in (-1, 0, 1):
                s = oy * W + ox
                v = src if s == 0 else pltpu.roll(src, (-s) % HW, axis=1)
                ok = row_ok[oy]
                if col_ok[ox] is not None:
                    ok = col_ok[ox] if ok is None else (ok & col_ok[ox])
                if ok is not None:
                    v = jnp.where(ok, v, 0.0)
                patches_ref[t * cin:(t + 1) * cin, :] = v
                t += 1

    def inst_norm(y):
        # InstanceNorm2d(affine=False, eps, biased variance) over spatial dims,
        # fused single-pass statistics: var = E[y^2] - mean^2.
        s1 = jnp.sum(y, axis=1, keepdims=True)
        s2 = jnp.sum(y * y, axis=1, keepdims=True)
        m = s1 * (1.0 / HW)
        v = s2 * (1.0 / HW) - m * m
        return (y - m) * lax.rsqrt(v + eps)

    alpha = alpha_ref[...]                                  # (2C, 1)

    # ---- conv1: 3x3, C -> 2C, one (2C, 9C) x (9C, HW) MXU matmul ----
    im2col(x, C, p1_ref)
    y1 = jnp.dot(w1_ref[...], p1_ref[...], preferred_element_type=f32)   # (2C, HW)
    y1 = inst_norm(y1)
    y1 = jnp.where(y1 >= 0, y1, alpha * y1)                 # PReLU (per-channel)

    # ---- conv2: 3x3, 2C -> C, one (C, 18C) x (18C, HW) MXU matmul ----
    im2col(y1, C2, p2_ref)
    y2 = jnp.dot(w2_ref[...], p2_ref[...], preferred_element_type=f32)   # (C, HW)
    # bn2 is InstanceNorm2d(2*planes) applied to planes channels; harmless since affine=False.
    y2 = inst_norm(y2)
    y2 = y2 + x                                             # residual: input is already resident
    # TODO(synk): PyTorch nn.PReLU(2*planes) applied to a planes-channel tensor raises at
    # runtime; we use the first `planes` slopes (all 0.25 at init), same as the reference.
    a2 = alpha[0:C, :]
    out = jnp.where(y2 >= 0, y2, a2 * y2)

    o_ref[...] = out.astype(o_ref.dtype)                    # dense 128-lane store


def basic_block_forward(x_nchw, w1_hwio, w2_hwio, prelu_alpha, eps=1e-5):
    """Pallas TPU forward of BasicBlock. x_nchw: (N, C, H, W) float32."""
    N, C, H, W = x_nchw.shape
    C2, HW = 2 * C, H * W
    assert w1_hwio.shape == (3, 3, C, C2)
    assert w2_hwio.shape == (3, 3, C2, C)

    x = x_nchw.reshape(N, C, HW).astype(jnp.float32)        # free reshape (NCHW contiguous)
    # (3,3,Cin,Cout) -> (Cout, 9*Cin) with column index (dy*3+dx)*Cin + cin
    w1 = jnp.transpose(w1_hwio, (3, 0, 1, 2)).reshape(C2, 9 * C).astype(jnp.float32)
    w2 = jnp.transpose(w2_hwio, (3, 0, 1, 2)).reshape(C, 9 * C2).astype(jnp.float32)
    alpha = prelu_alpha.reshape(C2, 1).astype(jnp.float32)
    col = jnp.tile(jnp.arange(W, dtype=jnp.int32), H).reshape(1, HW)

    kernel = functools.partial(_basic_block_kernel, H, W, C, eps)

    y = pl.pallas_call(
        kernel,
        out_shape=jax.ShapeDtypeStruct((N, C, HW), jnp.float32),
        grid_spec=pltpu.PrefetchScalarGridSpec(
            num_scalar_prefetch=0,
            grid=(N,),
            in_specs=[
                pl.BlockSpec((pl.Squeezed(), C, HW), lambda n: (n, 0, 0)),
                pl.BlockSpec((C2, 9 * C), lambda n: (0, 0)),
                pl.BlockSpec((C, 9 * C2), lambda n: (0, 0)),
                pl.BlockSpec((C2, 1), lambda n: (0, 0)),
                pl.BlockSpec((1, HW), lambda n: (0, 0)),
            ],
            out_specs=pl.BlockSpec((pl.Squeezed(), C, HW), lambda n: (n, 0, 0)),
            scratch_shapes=[
                pltpu.VMEM((9 * C, HW), jnp.float32),        # conv1 im2col patches (~36 KiB)
                pltpu.VMEM((9 * C2, HW), jnp.float32),       # conv2 im2col patches (~72 KiB)
            ],
        ),
        # Batch steps shard across TensorCores on v7x; per-step VMEM is ~120 KiB here.
        # TODO(synk): for production H/W/C add an H-tile grid axis (1-row halo) and set
        # vmem_limit_bytes so the per-step footprint fits v7x's 64 MiB VMEM.
        compiler_params=pltpu.CompilerParams(
            dimension_semantics=("parallel",)),
    )(x, w1, w2, alpha, col)

    return y.reshape(N, C, H, W)


def _reference_forward(x_nchw, w1_hwio, w2_hwio, prelu_alpha, eps=1e-5):
    """Pure-JAX reference (mirrors the PyTorch forward semantics)."""
    x = jnp.transpose(x_nchw, (0, 2, 3, 1)).astype(jnp.float32)

    def inorm(t):
        m = jnp.mean(t, axis=(1, 2), keepdims=True)
        v = jnp.mean((t - m) ** 2, axis=(1, 2), keepdims=True)
        return (t - m) * lax.rsqrt(v + eps)

    def prelu(t, a):
        return jnp.where(t >= 0, t, a * t)

    dn1 = lax.conv_dimension_numbers(x.shape, w1_hwio.shape, ("NHWC", "HWIO", "NHWC"))
    out = lax.conv_general_dilated(x, w1_hwio, (1, 1), "SAME", dimension_numbers=dn1)
    out = inorm(out)
    out = prelu(out, prelu_alpha.reshape(1, 1, 1, -1))
    dn2 = lax.conv_dimension_numbers(out.shape, w2_hwio.shape, ("NHWC", "HWIO", "NHWC"))
    out = lax.conv_general_dilated(out, w2_hwio, (1, 1), "SAME", dimension_numbers=dn2)
    out = inorm(out)
    out = out + x
    out = prelu(out, prelu_alpha.reshape(1, 1, 1, -1)[..., :x.shape[-1]])
    return jnp.transpose(out, (0, 3, 1, 2))


if __name__ == "__main__":
    key = jax.random.PRNGKey(0)
    k_x, k_w1, k_w2 = jax.random.split(key, 3)

    N, planes, H, W = 2, 4, 16, 16          # planes=4 -> conv1 has 8 output channels
    x = jax.random.normal(k_x, (N, planes, H, W), jnp.float32)
    w1 = jax.random.normal(k_w1, (3, 3, planes, 2 * planes), jnp.float32) * 0.1
    w2 = jax.random.normal(k_w2, (3, 3, 2 * planes, planes), jnp.float32) * 0.1
    alpha = jnp.full((2 * planes,), 0.25, jnp.float32)   # PReLU default init

    y = basic_block_forward(x, w1, w2, alpha)
    y = jax.block_until_ready(y)

    y_ref = _reference_forward(x, w1, w2, alpha)
    assert y.shape == (N, planes, H, W)
    np.testing.assert_allclose(np.asarray(y), np.asarray(y_ref), atol=1e-3, rtol=1e-3)

    print("KERNEL_OK")
</pallas_src>

<mosaic_0001>
module attributes {stable_mosaic.version = 11 : i64} {
  func.func @_basic_block_kernel(%arg0: i32, %arg1: memref<1x4x256xf32, #tpu.memory_space<vmem>>, %arg2: memref<8x36xf32, #tpu.memory_space<vmem>>, %arg3: memref<4x72xf32, #tpu.memory_space<vmem>>, %arg4: memref<8x1xf32, #tpu.memory_space<vmem>>, %arg5: memref<1x256xi32, #tpu.memory_space<vmem>>, %arg6: memref<1x4x256xf32, #tpu.memory_space<vmem>>, %arg7: memref<36x256xf32, #tpu.memory_space<vmem>>, %arg8: memref<72x256xf32, #tpu.memory_space<vmem>>) attributes {dimension_semantics = [#tpu.dimension_semantics<parallel>], iteration_bounds = array<i64: 2>, scalar_prefetch = 0 : i64, scratch_operands = 2 : i64, tpu.core_type = #tpu.core_type<tc>, window_params = [{transform_indices = @transform_0, window_bounds = array<i64: 1, 4, 256>}, {pipeline_mode = #tpu.pipeline_mode<synchronous>, transform_indices = @transform_1, window_bounds = array<i64: 8, 36>}, {pipeline_mode = #tpu.pipeline_mode<synchronous>, transform_indices = @transform_2, window_bounds = array<i64: 4, 72>}, {pipeline_mode = #tpu.pipeline_mode<synchronous>, transform_indices = @transform_3, window_bounds = array<i64: 8, 1>}, {pipeline_mode = #tpu.pipeline_mode<synchronous>, transform_indices = @transform_4, window_bounds = array<i64: 1, 256>}, {transform_indices = @transform_5, window_bounds = array<i64: 1, 4, 256>}]} {
    %c0 = arith.constant 0 : index
    %c0_0 = arith.constant 0 : index
    %c0_1 = arith.constant 0 : index
    %0 = vector.load %arg1[%c0, %c0_0, %c0_1] : memref<1x4x256xf32, #tpu.memory_space<vmem>>, vector<1x4x256xf32>
    %1 = vector.shape_cast %0 : vector<1x4x256xf32> to vector<4x256xf32>
    %2 = tpu.iota {dimensions = array<i32: 1>} : vector<1x256xi32>
    %c0_2 = arith.constant 0 : index
    %c0_3 = arith.constant 0 : index
    %3 = vector.load %arg5[%c0_2, %c0_3] : memref<1x256xi32, #tpu.memory_space<vmem>>, vector<1x256xi32>
    %c16_i32 = arith.constant 16 : i32
    %4 = vector.broadcast %c16_i32 : i32 to vector<1x256xi32>
    %5 = arith.cmpi sge, %2, %4 : vector<1x256xi32>
    %c240_i32 = arith.constant 240 : i32
    %6 = vector.broadcast %c240_i32 : i32 to vector<1x256xi32>
    %7 = arith.cmpi slt, %2, %6 : vector<1x256xi32>
    %c1_i32 = arith.constant 1 : i32
    %8 = vector.broadcast %c1_i32 : i32 to vector<1x256xi32>
    %9 = arith.cmpi sge, %3, %8 : vector<1x256xi32>
    %c14_i32 = arith.constant 14 : i32
    %10 = vector.broadcast %c14_i32 : i32 to vector<1x256xi32>
    %11 = arith.cmpi sle, %3, %10 : vector<1x256xi32>
    %c0_4 = arith.constant 0 : index
    %c0_5 = arith.constant 0 : index
    %12 = vector.load %arg4[%c0_4, %c0_5] : memref<8x1xf32, #tpu.memory_space<vmem>>, vector<8x1xf32>
    %c17_i32 = arith.constant 17 : i32
    %13 = tpu.dynamic_rotate %1 by %c17_i32 dim 1 : vector<4x256xf32>, i32 -> vector<4x256xf32>
    %14 = arith.andi %5, %9 : vector<1x256xi1>
    %cst = arith.constant 0.000000e+00 : f32
    %15 = vector.shape_cast %14 : vector<1x256xi1> to vector<1x256xi1>
    %16 = vector.broadcast %15 : vector<1x256xi1> to vector<4x256xi1>
    %17 = vector.broadcast %cst : f32 to vector<4x256xf32>
    %18 = arith.select %16, %13, %17 : vector<4x256xi1>, vector<4x256xf32>
    %c0_6 = arith.constant 0 : index
    %c0_7 = arith.constant 0 : index
    %19 = vector.load %arg7[%c0_6, %c0_7] : memref<36x256xf32, #tpu.memory_space<vmem>>, vector<4x256xf32>
    tpu.vector_store %arg7[%c0_6, %c0_7], %18 {strides = array<i32>} : memref<36x256xf32, #tpu.memory_space<vmem>>, vector<4x256xf32>,
    %c16_i32_8 = arith.constant 16 : i32
    %20 = tpu.dynamic_rotate %1 by %c16_i32_8 dim 1 : vector<4x256xf32>, i32 -> vector<4x256xf32>
    %cst_9 = arith.constant 0.000000e+00 : f32
    %21 = vector.shape_cast %5 : vector<1x256xi1> to vector<1x256xi1>
    %22 = vector.broadcast %21 : vector<1x256xi1> to vector<4x256xi1>
    %23 = vector.broadcast %cst_9 : f32 to vector<4x256xf32>
    %24 = arith.select %22, %20, %23 : vector<4x256xi1>, vector<4x256xf32>
    %c4 = arith.constant 4 : index
    %c0_10 = arith.constant 0 : index
    %25 = vector.load %arg7[%c4, %c0_10] : memref<36x256xf32, #tpu.memory_space<vmem>>, vector<4x256xf32>
    tpu.vector_store %arg7[%c4, %c0_10], %24 {strides = array<i32>} : memref<36x256xf32, #tpu.memory_space<vmem>>, vector<4x256xf32>,
    %c15_i32 = arith.constant 15 : i32
    %26 = tpu.dynamic_rotate %1 by %c15_i32 dim 1 : vector<4x256xf32>, i32 -> vector<4x256xf32>
    %27 = arith.andi %5, %11 : vector<1x256xi1>
    %cst_11 = arith.constant 0.000000e+00 : f32
    %28 = vector.shape_cast %27 : vector<1x256xi1> to vector<1x256xi1>
    %29 = vector.broadcast %28 : vector<1x256xi1> to vector<4x256xi1>
    %30 = vector.broadcast %cst_11 : f32 to vector<4x256xf32>
    %31 = arith.select %29, %26, %30 : vector<4x256xi1>, vector<4x256xf32>
    %c8 = arith.constant 8 : index
    %c0_12 = arith.constant 0 : index
    %32 = vector.load %arg7[%c8, %c0_12] : memref<36x256xf32, #tpu.memory_space<vmem>>, vector<4x256xf32>
    tpu.vector_store %arg7[%c8, %c0_12], %31 {strides = array<i32>} : memref<36x256xf32, #tpu.memory_space<vmem>>, vector<4x256xf32>,
    %c1_i32_13 = arith.constant 1 : i32
    %33 = tpu.dynamic_rotate %1 by %c1_i32_13 dim 1 : vector<4x256xf32>, i32 -> vector<4x256xf32>
    %cst_14 = arith.constant 0.000000e+00 : f32
    %34 = vector.shape_cast %9 : vector<1x256xi1> to vector<1x256xi1>
    %35 = vector.broadcast %34 : vector<1x256xi1> to vector<4x256xi1>
    %36 = vector.broadcast %cst_14 : f32 to vector<4x256xf32>
    %37 = arith.select %35, %33, %36 : vector<4x256xi1>, vector<4x256xf32>
    %c12 = arith.constant 12 : index
    %c0_15 = arith.constant 0 : index
    %38 = vector.load %arg7[%c12, %c0_15] : memref<36x256xf32, #tpu.memory_space<vmem>>, vector<4x256xf32>
    tpu.vector_store %arg7[%c12, %c0_15], %37 {strides = array<i32>} : memref<36x256xf32, #tpu.memory_space<vmem>>, vector<4x256xf32>,
    %c16 = arith.constant 16 : index
    %c0_16 = arith.constant 0 : index
    %39 = vector.load %arg7[%c16, %c0_16] : memref<36x256xf32, #tpu.memory_space<vmem>>, vector<4x256xf32>
    tpu.vector_store %arg7[%c16, %c0_16], %1 {strides = array<i32>} : memref<36x256xf32, #tpu.memory_space<vmem>>, vector<4x256xf32>,
    %c255_i32 = arith.constant 255 : i32
    %40 = tpu.dynamic_rotate %1 by %c255_i32 dim 1 : vector<4x256xf32>, i32 -> vector<4x256xf32>
    %cst_17 = arith.constant 0.000000e+00 : f32
    %41 = vector.shape_cast %11 : vector<1x256xi1> to vector<1x256xi1>
    %42 = vector.broadcast %41 : vector<1x256xi1> to vector<4x256xi1>
    %43 = vector.broadcast %cst_17 : f32 to vector<4x256xf32>
    %44 = arith.select %42, %40, %43 : vector<4x256xi1>, vector<4x256xf32>
    %c20 = arith.constant 20 : index
    %c0_18 = arith.constant 0 : index
    %45 = vector.load %arg7[%c20, %c0_18] : memref<36x256xf32, #tpu.memory_space<vmem>>, vector<4x256xf32>
    tpu.vector_store %arg7[%c20, %c0_18], %44 {strides = array<i32>} : memref<36x256xf32, #tpu.memory_space<vmem>>, vector<4x256xf32>,
    %c241_i32 = arith.constant 241 : i32
    %46 = tpu.dynamic_rotate %1 by %c241_i32 dim 1 : vector<4x256xf32>, i32 -> vector<4x256xf32>
    %47 = arith.andi %7, %9 : vector<1x256xi1>
    %cst_19 = arith.constant 0.000000e+00 : f32
    %48 = vector.shape_cast %47 : vector<1x256xi1> to vector<1x256xi1>
    %49 = vector.broadcast %48 : vector<1x256xi1> to vector<4x256xi1>
    %50 = vector.broadcast %cst_19 : f32 to vector<4x256xf32>
    %51 = arith.select %49, %46, %50 : vector<4x256xi1>, vector<4x256xf32>
    %c24 = arith.constant 24 : index
    %c0_20 = arith.constant 0 : index
    %52 = vector.load %arg7[%c24, %c0_20] : memref<36x256xf32, #tpu.memory_space<vmem>>, vector<4x256xf32>
    tpu.vector_store %arg7[%c24, %c0_20], %51 {strides = array<i32>} : memref<36x256xf32, #tpu.memory_space<vmem>>, vector<4x256xf32>,
    %c240_i32_21 = arith.constant 240 : i32
    %53 = tpu.dynamic_rotate %1 by %c240_i32_21 dim 1 : vector<4x256xf32>, i32 -> vector<4x256xf32>
    %cst_22 = arith.constant 0.000000e+00 : f32
    %54 = vector.shape_cast %7 : vector<1x256xi1> to vector<1x256xi1>
    %55 = vector.broadcast %54 : vector<1x256xi1> to vector<4x256xi1>
    %56 = vector.broadcast %cst_22 : f32 to vector<4x256xf32>
    %57 = arith.select %55, %53, %56 : vector<4x256xi1>, vector<4x256xf32>
    %c28 = arith.constant 28 : index
    %c0_23 = arith.constant 0 : index
    %58 = vector.load %arg7[%c28, %c0_23] : memref<36x256xf32, #tpu.memory_space<vmem>>, vector<4x256xf32>
    tpu.vector_store %arg7[%c28, %c0_23], %57 {strides = array<i32>} : memref<36x256xf32, #tpu.memory_space<vmem>>, vector<4x256xf32>,
    %c239_i32 = arith.constant 239 : i32
    %59 = tpu.dynamic_rotate %1 by %c239_i32 dim 1 : vector<4x256xf32>, i32 -> vector<4x256xf32>
    %60 = arith.andi %7, %11 : vector<1x256xi1>
    %cst_24 = arith.constant 0.000000e+00 : f32
    %61 = vector.shape_cast %60 : vector<1x256xi1> to vector<1x256xi1>
    %62 = vector.broadcast %61 : vector<1x256xi1> to vector<4x256xi1>
    %63 = vector.broadcast %cst_24 : f32 to vector<4x256xf32>
    %64 = arith.select %62, %59, %63 : vector<4x256xi1>, vector<4x256xf32>
    %c32 = arith.constant 32 : index
    %c0_25 = arith.constant 0 : index
    %65 = vector.load %arg7[%c32, %c0_25] : memref<36x256xf32, #tpu.memory_space<vmem>>, vector<4x256xf32>
    tpu.vector_store %arg7[%c32, %c0_25], %64 {strides = array<i32>} : memref<36x256xf32, #tpu.memory_space<vmem>>, vector<4x256xf32>,
    %c0_26 = arith.constant 0 : index
    %c0_27 = arith.constant 0 : index
    %66 = vector.load %arg2[%c0_26, %c0_27] : memref<8x36xf32, #tpu.memory_space<vmem>>, vector<8x36xf32>
    %c0_28 = arith.constant 0 : index
    %c0_29 = arith.constant 0 : index
    %67 = vector.load %arg7[%c0_28, %c0_29] : memref<36x256xf32, #tpu.memory_space<vmem>>, vector<36x256xf32>
    %cst_30 = arith.constant dense<0.000000e+00> : vector<8x256xf32>
    %68 = tpu.matmul %66, %67, %cst_30 {dimension_numbers = #tpu.dot_dimension_numbers<[1], [0], [0], [1], [0, 0, 1, 1], [], []>} : vector<8x36xf32>, vector<36x256xf32>, vector<8x256xf32> -> vector<8x256xf32>
    %cst_31 = arith.constant dense<0.000000e+00> : vector<8xf32>
    %69 = vector.multi_reduction <add>, %68, %cst_31 [1] : vector<8x256xf32> to vector<8xf32>
    %70 = vector.shape_cast %69 : vector<8xf32> to vector<8x1xf32>
    %71 = arith.mulf %68, %68 : vector<8x256xf32>
    %cst_32 = arith.constant dense<0.000000e+00> : vector<8xf32>
    %72 = vector.multi_reduction <add>, %71, %cst_32 [1] : vector<8x256xf32> to vector<8xf32>
    %73 = vector.shape_cast %72 : vector<8xf32> to vector<8x1xf32>
    %cst_33 = arith.constant 3.906250e-03 : f32
    %74 = vector.broadcast %cst_33 : f32 to vector<8x1xf32>
    %75 = arith.mulf %70, %74 : vector<8x1xf32>
    %cst_34 = arith.constant 3.906250e-03 : f32
    %76 = vector.broadcast %cst_34 : f32 to vector<8x1xf32>
    %77 = arith.mulf %73, %76 : vector<8x1xf32>
    %78 = arith.mulf %75, %75 : vector<8x1xf32>
    %79 = arith.subf %77, %78 : vector<8x1xf32>
    %80 = vector.broadcast %75 : vector<8x1xf32> to vector<8x256xf32>
    %81 = arith.subf %68, %80 : vector<8x256xf32>
    %cst_35 = arith.constant 9.99999974E-6 : f32
    %82 = vector.broadcast %cst_35 : f32 to vector<8x1xf32>
    %83 = arith.addf %79, %82 : vector<8x1xf32>
    %84 = math.rsqrt %83 : vector<8x1xf32>
    %85 = vector.broadcast %84 : vector<8x1xf32> to vector<8x256xf32>
    %86 = arith.mulf %81, %85 : vector<8x256xf32>
    %cst_36 = arith.constant 0.000000e+00 : f32
    %87 = vector.broadcast %cst_36 : f32 to vector<8x256xf32>
    %88 = arith.cmpf oge, %86, %87 : vector<8x256xf32>
    %89 = vector.broadcast %12 : vector<8x1xf32> to vector<8x256xf32>
    %90 = arith.mulf %89, %86 : vector<8x256xf32>
    %91 = arith.select %88, %86, %90 : vector<8x256xi1>, vector<8x256xf32>
    %c17_i32_37 = arith.constant 17 : i32
    %92 = tpu.dynamic_rotate %91 by %c17_i32_37 dim 1 : vector<8x256xf32>, i32 -> vector<8x256xf32>
    %93 = arith.andi %5, %9 : vector<1x256xi1>
    %cst_38 = arith.constant 0.000000e+00 : f32
    %94 = vector.shape_cast %93 : vector<1x256xi1> to vector<1x256xi1>
    %95 = vector.broadcast %94 : vector<1x256xi1> to vector<8x256xi1>
    %96 = vector.broadcast %cst_38 : f32 to vector<8x256xf32>
    %97 = arith.select %95, %92, %96 : vector<8x256xi1>, vector<8x256xf32>
    %c0_39 = arith.constant 0 : index
    %c0_40 = arith.constant 0 : index
    %98 = vector.load %arg8[%c0_39, %c0_40] : memref<72x256xf32, #tpu.memory_space<vmem>>, vector<8x256xf32>
    tpu.vector_store %arg8[%c0_39, %c0_40], %97 {strides = array<i32>} : memref<72x256xf32, #tpu.memory_space<vmem>>, vector<8x256xf32>,
    %c16_i32_41 = arith.constant 16 : i32
    %99 = tpu.dynamic_rotate %91 by %c16_i32_41 dim 1 : vector<8x256xf32>, i32 -> vector<8x256xf32>
    %cst_42 = arith.constant 0.000000e+00 : f32
    %100 = vector.shape_cast %5 : vector<1x256xi1> to vector<1x256xi1>
    %101 = vector.broadcast %100 : vector<1x256xi1> to vector<8x256xi1>
    %102 = vector.broadcast %cst_42 : f32 to vector<8x256xf32>
    %103 = arith.select %101, %99, %102 : vector<8x256xi1>, vector<8x256xf32>
    %c8_43 = arith.constant 8 : index
    %c0_44 = arith.constant 0 : index
    %104 = vector.load %arg8[%c8_43, %c0_44] : memref<72x256xf32, #tpu.memory_space<vmem>>, vector<8x256xf32>
    tpu.vector_store %arg8[%c8_43, %c0_44], %103 {strides = array<i32>} : memref<72x256xf32, #tpu.memory_space<vmem>>, vector<8x256xf32>,
    %c15_i32_45 = arith.constant 15 : i32
    %105 = tpu.dynamic_rotate %91 by %c15_i32_45 dim 1 : vector<8x256xf32>, i32 -> vector<8x256xf32>
    %106 = arith.andi %5, %11 : vector<1x256xi1>
    %cst_46 = arith.constant 0.000000e+00 : f32
    %107 = vector.shape_cast %106 : vector<1x256xi1> to vector<1x256xi1>
    %108 = vector.broadcast %107 : vector<1x256xi1> to vector<8x256xi1>
    %109 = vector.broadcast %cst_46 : f32 to vector<8x256xf32>
    %110 = arith.select %108, %105, %109 : vector<8x256xi1>, vector<8x256xf32>
    %c16_47 = arith.constant 16 : index
    %c0_48 = arith.constant 0 : index
    %111 = vector.load %arg8[%c16_47, %c0_48] : memref<72x256xf32, #tpu.memory_space<vmem>>, vector<8x256xf32>
    tpu.vector_store %arg8[%c16_47, %c0_48], %110 {strides = array<i32>} : memref<72x256xf32, #tpu.memory_space<vmem>>, vector<8x256xf32>,
    %c1_i32_49 = arith.constant 1 : i32
    %112 = tpu.dynamic_rotate %91 by %c1_i32_49 dim 1 : vector<8x256xf32>, i32 -> vector<8x256xf32>
    %cst_50 = arith.constant 0.000000e+00 : f32
    %113 = vector.shape_cast %9 : vector<1x256xi1> to vector<1x256xi1>
    %114 = vector.broadcast %113 : vector<1x256xi1> to vector<8x256xi1>
    %115 = vector.broadcast %cst_50 : f32 to vector<8x256xf32>
    %116 = arith.select %114, %112, %115 : vector<8x256xi1>, vector<8x256xf32>
    %c24_51 = arith.constant 24 : index
    %c0_52 = arith.constant 0 : index
    %117 = vector.load %arg8[%c24_51, %c0_52] : memref<72x256xf32, #tpu.memory_space<vmem>>, vector<8x256xf32>
    tpu.vector_store %arg8[%c24_51, %c0_52], %116 {strides = array<i32>} : memref<72x256xf32, #tpu.memory_space<vmem>>, vector<8x256xf32>,
    %c32_53 = arith.constant 32 : index
    %c0_54 = arith.constant 0 : index
    %118 = vector.load %arg8[%c32_53, %c0_54] : memref<72x256xf32, #tpu.memory_space<vmem>>, vector<8x256xf32>
    tpu.vector_store %arg8[%c32_53, %c0_54], %91 {strides = array<i32>} : memref<72x256xf32, #tpu.memory_space<vmem>>, vector<8x256xf32>,
    %c255_i32_55 = arith.constant 255 : i32
    %119 = tpu.dynamic_rotate %91 by %c255_i32_55 dim 1 : vector<8x256xf32>, i32 -> vector<8x256xf32>
    %cst_56 = arith.constant 0.000000e+00 : f32
    %120 = vector.shape_cast %11 : vector<1x256xi1> to vector<1x256xi1>
    %121 = vector.broadcast %120 : vector<1x256xi1> to vector<8x256xi1>
    %122 = vector.broadcast %cst_56 : f32 to vector<8x256xf32>
    %123 = arith.select %121, %119, %122 : vector<8x256xi1>, vector<8x256xf32>
    %c40 = arith.constant 40 : index
    %c0_57 = arith.constant 0 : index
    %124 = vector.load %arg8[%c40, %c0_57] : memref<72x256xf32, #tpu.memory_space<vmem>>, vector<8x256xf32>
    tpu.vector_store %arg8[%c40, %c0_57], %123 {strides = array<i32>} : memref<72x256xf32, #tpu.memory_space<vmem>>, vector<8x256xf32>,
    %c241_i32_58 = arith.constant 241 : i32
    %125 = tpu.dynamic_rotate %91 by %c241_i32_58 dim 1 : vector<8x256xf32>, i32 -> vector<8x256xf32>
    %126 = arith.andi %7, %9 : vector<1x256xi1>
    %cst_59 = arith.constant 0.000000e+00 : f32
    %127 = vector.shape_cast %126 : vector<1x256xi1> to vector<1x256xi1>
    %128 = vector.broadcast %127 : vector<1x256xi1> to vector<8x256xi1>
    %129 = vector.broadcast %cst_59 : f32 to vector<8x256xf32>
    %130 = arith.select %128, %125, %129 : vector<8x256xi1>, vector<8x256xf32>
    %c48 = arith.constant 48 : index
    %c0_60 = arith.constant 0 : index
    %131 = vector.load %arg8[%c48, %c0_60] : memref<72x256xf32, #tpu.memory_space<vmem>>, vector<8x256xf32>
    tpu.vector_store %arg8[%c48, %c0_60], %130 {strides = array<i32>} : memref<72x256xf32, #tpu.memory_space<vmem>>, vector<8x256xf32>,
    %c240_i32_61 = arith.constant 240 : i32
    %132 = tpu.dynamic_rotate %91 by %c240_i32_61 dim 1 : vector<8x256xf32>, i32 -> vector<8x256xf32>
    %cst_62 = arith.constant 0.000000e+00 : f32
    %133 = vector.shape_cast %7 : vector<1x256xi1> to vector<1x256xi1>
    %134 = vector.broadcast %133 : vector<1x256xi1> to vector<8x256xi1>
    %135 = vector.broadcast %cst_62 : f32 to vector<8x256xf32>
    %136 = arith.select %134, %132, %135 : vector<8x256xi1>, vector<8x256xf32>
    %c56 = arith.constant 56 : index
    %c0_63 = arith.constant 0 : index
    %137 = vector.load %arg8[%c56, %c0_63] : memref<72x256xf32, #tpu.memory_space<vmem>>, vector<8x256xf32>
    tpu.vector_store %arg8[%c56, %c0_63], %136 {strides = array<i32>} : memref<72x256xf32, #tpu.memory_space<vmem>>, vector<8x256xf32>,
    %c239_i32_64 = arith.constant 239 : i32
    %138 = tpu.dynamic_rotate %91 by %c239_i32_64 dim 1 : vector<8x256xf32>, i32 -> vector<8x256xf32>
    %139 = arith.andi %7, %11 : vector<1x256xi1>
    %cst_65 = arith.constant 0.000000e+00 : f32
    %140 = vector.shape_cast %139 : vector<1x256xi1> to vector<1x256xi1>
    %141 = vector.broadcast %140 : vector<1x256xi1> to vector<8x256xi1>
    %142 = vector.broadcast %cst_65 : f32 to vector<8x256xf32>
    %143 = arith.select %141, %138, %142 : vector<8x256xi1>, vector<8x256xf32>
    %c64 = arith.constant 64 : index
    %c0_66 = arith.constant 0 : index
    %144 = vector.load %arg8[%c64, %c0_66] : memref<72x256xf32, #tpu.memory_space<vmem>>, vector<8x256xf32>
    tpu.vector_store %arg8[%c64, %c0_66], %143 {strides = array<i32>} : memref<72x256xf32, #tpu.memory_space<vmem>>, vector<8x256xf32>,
    %c0_67 = arith.constant 0 : index
    %c0_68 = arith.constant 0 : index
    %145 = vector.load %arg3[%c0_67, %c0_68] : memref<4x72xf32, #tpu.memory_space<vmem>>, vector<4x72xf32>
    %c0_69 = arith.constant 0 : index
    %c0_70 = arith.constant 0 : index
    %146 = vector.load %arg8[%c0_69, %c0_70] : memref<72x256xf32, #tpu.memory_space<vmem>>, vector<72x256xf32>
    %cst_71 = arith.constant dense<0.000000e+00> : vector<4x256xf32>
    %147 = tpu.matmul %145, %146, %cst_71 {dimension_numbers = #tpu.dot_dimension_numbers<[1], [0], [0], [1], [0, 0, 1, 1], [], []>} : vector<4x72xf32>, vector<72x256xf32>, vector<4x256xf32> -> vector<4x256xf32>
    %cst_72 = arith.constant dense<0.000000e+00> : vector<4xf32>
    %148 = vector.multi_reduction <add>, %147, %cst_72 [1] : vector<4x256xf32> to vector<4xf32>
    %149 = vector.shape_cast %148 : vector<4xf32> to vector<4x1xf32>
    %150 = arith.mulf %147, %147 : vector<4x256xf32>
    %cst_73 = arith.constant dense<0.000000e+00> : vector<4xf32>
    %151 = vector.multi_reduction <add>, %150, %cst_73 [1] : vector<4x256xf32> to vector<4xf32>
    %152 = vector.shape_cast %151 : vector<4xf32> to vector<4x1xf32>
    %cst_74 = arith.constant 3.906250e-03 : f32
    %153 = vector.broadcast %cst_74 : f32 to vector<4x1xf32>
    %154 = arith.mulf %149, %153 : vector<4x1xf32>
    %cst_75 = arith.constant 3.906250e-03 : f32
    %155 = vector.broadcast %cst_75 : f32 to vector<4x1xf32>
    %156 = arith.mulf %152, %155 : vector<4x1xf32>
    %157 = arith.mulf %154, %154 : vector<4x1xf32>
    %158 = arith.subf %156, %157 : vector<4x1xf32>
    %159 = vector.broadcast %154 : vector<4x1xf32> to vector<4x256xf32>
    %160 = arith.subf %147, %159 : vector<4x256xf32>
    %cst_76 = arith.constant 9.99999974E-6 : f32
    %161 = vector.broadcast %cst_76 : f32 to vector<4x1xf32>
    %162 = arith.addf %158, %161 : vector<4x1xf32>
    %163 = math.rsqrt %162 : vector<4x1xf32>
    %164 = vector.broadcast %163 : vector<4x1xf32> to vector<4x256xf32>
    %165 = arith.mulf %160, %164 : vector<4x256xf32>
    %166 = arith.addf %165, %1 : vector<4x256xf32>
    %167 = vector.extract_strided_slice %12 {offsets = [0, 0], sizes = [4, 1], strides = [1, 1]} : vector<8x1xf32> to vector<4x1xf32>
    %cst_77 = arith.constant 0.000000e+00 : f32
    %168 = vector.broadcast %cst_77 : f32 to vector<4x256xf32>
    %169 = arith.cmpf oge, %166, %168 : vector<4x256xf32>
    %170 = vector.broadcast %167 : vector<4x1xf32> to vector<4x256xf32>
    %171 = arith.mulf %170, %166 : vector<4x256xf32>
    %172 = arith.select %169, %166, %171 : vector<4x256xi1>, vector<4x256xf32>
    %c0_78 = arith.constant 0 : index
    %c0_79 = arith.constant 0 : index
    %c0_80 = arith.constant 0 : index
    %173 = vector.load %arg6[%c0_78, %c0_79, %c0_80] : memref<1x4x256xf32, #tpu.memory_space<vmem>>, vector<1x4x256xf32>
    %174 = vector.shape_cast %173 : vector<1x4x256xf32> to vector<4x256xf32>
    %175 = vector.shape_cast %172 : vector<4x256xf32> to vector<1x4x256xf32>
    tpu.vector_store %arg6[%c0_78, %c0_79, %c0_80], %175 {strides = array<i32>} : memref<1x4x256xf32, #tpu.memory_space<vmem>>, vector<1x4x256xf32>,
    return
  }
  func.func @transform_0(%arg0: i32) -> (i32, i32, i32) {
    %c0_i32 = arith.constant 0 : i32
    %c0_i32_0 = arith.constant 0 : i32
    %c0_i32_1 = arith.constant 0 : i32
    return %arg0, %c0_i32, %c0_i32_0 : i32, i32, i32
  }
  func.func @transform_1(%arg0: i32) -> (i32, i32) {
    %c0_i32 = arith.constant 0 : i32
    %c0_i32_0 = arith.constant 0 : i32
    %c0_i32_1 = arith.constant 0 : i32
    return %c0_i32, %c0_i32_0 : i32, i32
  }
  func.func @transform_2(%arg0: i32) -> (i32, i32) {
    %c0_i32 = arith.constant 0 : i32
    %c0_i32_0 = arith.constant 0 : i32
    %c0_i32_1 = arith.constant 0 : i32
    return %c0_i32, %c0_i32_0 : i32, i32
  }
  func.func @transform_3(%arg0: i32) -> (i32, i32) {
    %c0_i32 = arith.constant 0 : i32
    %c0_i32_0 = arith.constant 0 : i32
    %c0_i32_1 = arith.constant 0 : i32
    return %c0_i32, %c0_i32_0 : i32, i32
  }
  func.func @transform_4(%arg0: i32) -> (i32, i32) {
    %c0_i32 = arith.constant 0 : i32
    %c0_i32_0 = arith.constant 0 : i32
    %c0_i32_1 = arith.constant 0 : i32
    return %c0_i32, %c0_i32_0 : i32, i32
  }
  func.func @transform_5(%arg0: i32) -> (i32, i32, i32) {
    %c0_i32 = arith.constant 0 : i32
    %c0_i32_0 = arith.constant 0 : i32
    %c0_i32_1 = arith.constant 0 : i32
    return %arg0, %c0_i32, %c0_i32_0 : i32, i32, i32
  }
}

</mosaic_0001>

<bundles_post_ra>
// kernel: tpu_custom_call.1
= control target key start
LH: loop header
LB: loop body
LE: loop exit
PB: predicated region body
PF: predicated region fallthrough
CT: control target
= control target key end

     0   :  { %10 = vsyncpa [#allocation5], 0  ;;  %s1657_s0 = inlined_call_operand.hbm [shape: f32[2,4,256], index: 0, kind: input, shape index: {}]   ;;  %s1658_s1 = inlined_call_operand.vmem [shape: f32[8,36], index: 1, kind: input, shape index: {}]   ;;  %s1659_s2 = inlined_call_operand.vmem [shape: f32[4,72], index: 2, kind: input, shape index: {}]   ;;  %s1660_s3 = inlined_call_operand.vmem [shape: f32[8,1], index: 3, kind: input, shape index: {}]   ;;  %s1661_s4 = inlined_call_operand.vmem [shape: s32[1,256], index: 4, kind: input, shape index: {}]   ;;  %s1662_s5 = inlined_call_operand.hbm [shape: f32[2,4,256], index: 5, kind: output, shape index: {}]  }
   0x1   :  { %12 = vsyncpa [#allocation5 + $0x1], 0 }
   0x2   :  { %13 = vsyncpa [#allocation6], 0 }
   0x3   :  { %15 = vsyncpa [#allocation6 + $0x1], 0  ;;  %s1183_s18 = smov 0   ;;  %s1185_s19 = smov 0  }
   0x4   :  { %s1187_s20 = smov 0   ;;  %s1189_s21 = smov 0  }
   0x5 LB: > { %s1204_s22 = sadd.s32 4294967295, %s1138_s21   ;;  %s878_s23 = sadd.s32 4294967294, %s1138_s21   ;;  %s1138_s21 = sphi %s1189_s21, %s1720_s21   ;;  %s1134_s20 = sphi %s1187_s20, %s1719_s20   ;;  %s1130_s19 = sphi %s1185_s19, %s1718_s19   ;;  %s1126_s18 = sphi %s1183_s18, %s1717_s18  }
   0x6   : > { %s1208_s24 = sadd.s32 1, %s1138_s21   ;;  %s28_s25 = sadd.s32 1, %s1134_s20 }
   0x7   : > { %s25_s26 = ssub.s32 %s1138_s21, %s1208_s24  ;;  %p35_p0 = scmp.ne.s32.totalorder %s1134_s20, %s1130_s19 }
   0x8   : > { %p26_p1 = scmp.eq.s32.totalorder %s25_s26, 0  ;;  %p36_p2 = scmp.eq.s32.totalorder %s1138_s21, 0 }
   0x9   : > { %p41_p3 = scmp.ne.s32.totalorder %s1130_s19, %s1126_s18  ;;  %p42_p4 = scmp.eq.s32.totalorder %s1204_s22, 0 }
   0xa   : > { %s1220_s27 = scalar_select %p26_p1, %s1134_s20, %s28_s25  }
   0xb   : > { %p1222_p5 = por %p36_p2, %p35_p0  ;;  %p1226_p6 = por %p42_p4, %p41_p3 }
   0xc   : > { %p149_p7 = scmp.eq.s32.totalorder %s1204_s22, 1  ;;  %p155_p8 = scmp.eq.s32.totalorder %s878_s23, 1 }
   0xd   : > { %p956_p10 = scmp.lt.s32.totalorder %s1138_s21, 2  ;;  %s187_s7 = sand.u32 1, %s1134_s20  }
   0xe   : > { %p1233_p11 = por %p149_p7, %p35_p0  ;;  %p1237_p12 = por %p155_p8, %p41_p3 }
   0xf   : > { %s896_s8 = sshll.u32 %s1138_s21, 7  ;;  %s881_s9 = sshll.u32 %s187_s7, 3 }
  0x10   : > { %s1676_s30 = scalar_select %p1233_p11, 1, 0 }
  0x11   : > { %s1677_s6 = scalar_select %p1237_p12, 1, 0 }
  0x12   : > { %s1246_s12 = scalar_lea.hbm %s1657_s0, %s896_s8  ;;  %s191_s13 = scalar_lea.vmem [#allocation4], %s881_s9 }
  0x13   : > { %s199_s14 = sshll.u32 %s191_s13, 4  ;;  %p1250_p13 = pnand %p956_p10, %p1222_p5  ;;  %s1254_s14 = int_to_ptr.vmem [resolvable:$true] %s199_s14 }
  0x14   : > { %s188_s16 = scalar_lea.sflag [#allocation5], %s187_s7  ;;  %s1042_s17 = scalar_lea.hbm %s1246_s12, 128 }
  0x15   : > { %p1043_p2 = scmp.ne.s32.totalorder %s1246_s12, %s1042_s17  ;;  %p1044_p3 = pneg %p1250_p13 }
  0x16   : > { %s1047_s26 = scalar_lea.hbm %s1657_s0, 256  ;;  %p1048_p5 = scmp.lt.u32.totalorder %s1246_s12, %s1657_s0 }
  0x17   : > { %p1045_p4 = pnand %p1044_p3, %p1043_p2  ;;  %p1049_p8 = scmp.lt.u32.totalorder %s1047_s26, %s1042_s17 }
  0x18   : > { %p1051_p9 = scmp.lt.u32.totalorder %s1042_s17, %s1246_s12 }
  0x19   : > { %p1046_p7 = pneg %p1045_p4  ;;  %p1050_p10 = por %p1049_p8, %p1048_p5 }
  0x1b   : > { %p1052_p0 = por %p1051_p9, %p1050_p10 }
  0x1d   : > { %p1053_p1 = pnand %p1052_p0, %p1046_p7 }
  0x1f   : > { %1056 = shalt.err (!%p1053_p1)
}
  0x20   : > { %s1057_s7 = scalar_lea.vmem %s1254_s14, 128  ;;  %s1140_s9 = smov [#allocation4]  }
  0x21   : > { %p1058_p2 = scmp.ne.s32.totalorder %s1254_s14, %s1057_s7  ;;  %s1062_s10 = sshll.u32 %s1140_s9, 4  ;;  %s1063_s10 = int_to_ptr.vmem [resolvable:$false] %s1062_s10 }
  0x22   : > { %s1064_s11 = scalar_lea.vmem %s1063_s10, 256  ;;  %p1065_p11 = scmp.lt.s32.totalorder %s1254_s14, %s1063_s10 }
  0x23   : > { %p1060_p4 = pnand %p1058_p2, %p1044_p3  ;;  %p1066_p5 = scmp.lt.s32.totalorder %s1064_s11, %s1057_s7 }
  0x25   : > { %p1061_p12 = pneg %p1060_p4  ;;  %p1067_p8 = por %p1066_p5, %p1065_p11 }
  0x27   : > { %p1068_p9 = pnand %p1067_p8, %p1061_p12 }
  0x29   : > { %1071 = shalt.err (!%p1068_p9)
}
  0x2a   : > { %951 = dma.hbm_to_vmem [thread:$0]  (!%p1250_p13), %s1246_s12, 128, %s1254_s14, %s188_s16  }
  0x2b   : > { %p1679_p0 = scmp.lt.s32.totalorder %s1138_s21, 3  ;;  %p1680_p1 = scmp.ge.s32.totalorder %s1138_s21, 1 }
  0x2d   : > { %p205_p3 = pnand %p1680_p1, %p1679_p0 }
  0x2e   : > { %s1288_s13 = sand.u32 (!%p205_p3), 1, %s1130_s19  }
  0x2f   : > { %208 = sbr.rel (%p205_p3) target bundleno = 1147 (0x47b), region = 40  ;;  %s885_s17 = sshll.u32 (!%p205_p3), %s1288_s13, 3 }
  0x30   : > { %s211_s23 = scalar_lea.sflag (!%p205_p3), [#allocation5], %s1288_s13  ;;  %s214_s15 = scalar_lea.vmem (!%p205_p3), [#allocation4], %s885_s17 }
  0x36   : > { %1117 = dma.done.wait (%p1226_p6), %s211_s23, 128  }
  0x37   : > { %1119 = vsyncadd (%p1226_p6), %s211_s23, 4294967168  ;;  %v1141_v0 = vmov 0   ;;  %v1299_v1 = vld [vmem:[%s214_s15] sm:$0xff]  ;;  %s1142_s12 = smov 16   ;;  %s1143_s14 = smov 1   ;;  %v1150_v3 = vmov 0.0   ;;  %v242_v4 = vlaneseq }
  0x38   : > { %1001 = vset.pattern.permute.xlu0 %v1141_v0  ;;  %292 = vrot.lane.b32.xlu1 %v1299_v1, %s1142_s12  ;;  %368 = vst [vmem:[#allocation2 + $0x20] sm:$0xf] %v1299_v1  ;;  %v1308_v2 = vcombine.high %v1299_v1, %v1299_v1  ;;  %s1144_s29 = smov 17   ;;  %s1145_s16 = smov 15   ;;  %v245_v5 = vld [vmem:[%s1661_s4] sm:$0x3] }
  0x39   : > { %349 = vrot.lane.b32.xlu0 %v1299_v1, %s1143_s14  ;;  %s1146_s25 = smov 127   ;;  %s1147_s26 = smov 112   ;;  %546 = vmatprep.mubr.f32.mxu0 %v1150_v3  ;;  %v265_v6 = vshrl.u32 %v242_v4, 7  ;;  %vm250_vm0 = vcmp.ge.s32.totalorder %v245_v5, 1  ;;  %vm251_vm1 = vcmp.le.s32.totalorder %v245_v5, 14  ;;  %v1345_v10 = vand.u32 127, %v242_v4 }
  0x3a   : > { %369 = vst [vmem:[#allocation2 + $0x28] sm:$0xf] %v1308_v2  ;;  %s1148_s28 = smov 113   ;;  %s1149_s8 = smov 111   ;;  %751 = vmatprep.mubr.f32.mxu1 %v1150_v3  ;;  %v263_v8 = vsel %vm250_vm0, 1, %v1141_v0  ;;  %v320_v12 = vsel %vm251_vm1, 1, %v1141_v0 }
  0x3b   : > { %v1342_v7 = vsub.s32 0, %v265_v6  ;;  %v270_v9 = vsub.s32 1, %v265_v6  ;;  %vm246_vm2 = vcmp.ge.s32.totalorder %v1345_v10, 16  ;;  %vm296_vm9 = vcmp.lt.s32.totalorder %v1345_v10, 16  ;;  %s794_s7 = scalar_lea.sflag [#allocation6], %s1288_s13  ;;  %p1714_p11 = scmp.ne.s32.totalorder %s1676_s30, 0 }
  0x3c   : > { %294 = vrot.lane.b32.xlu1 %v1308_v2, %s1142_s12  ;;  %vm260_vm10 = vcmp.lt.s32.totalorder %v1345_v10, 17  ;;  %v1384_v26 = vadd.s32 128, %v1345_v10  ;;  %vm1666_vm11 = vcmp.lt.s32.totalorder %v1345_v10, 1  ;;  %vm317_vm0 = vcmp.lt.s32.totalorder %v1345_v10, 15 }
  0x3d   : > { %256 = vrot.lane.b32.xlu0 %v1299_v1, %s1144_s29  ;;  %v1348_v11 = vrot.slane %v263_v8, %v1342_v7  ;;  %v1351_v13 = vrot.slane %v263_v8, %v270_v9  ;;  %v1356_v14 = vrot.slane %v320_v12, %v1342_v7  ;;  %v1358_v15 = vrot.slane %v320_v12, %v270_v9 }
  0x3e   : > { %vm1668_vm1 = vcmp.lt.s32.totalorder %v1384_v26, 240 }
  0x3f   : > { %vm272_vm3 = vcmp.ne.s32.totalorder %v1348_v11, 0  ;;  %vm273_vm4 = vcmp.ne.s32.totalorder %v1351_v13, 0  ;;  %vm329_vm6 = vcmp.ne.s32.totalorder %v1356_v14, 0  ;;  %vm330_vm7 = vcmp.ne.s32.totalorder %v1358_v15, 0 }
  0x40   : > { %258 = vrot.lane.b32.xlu1 %v1308_v2, %s1144_s29  ;;  %vm274_vm5 = vmand %vm246_vm2, %vm272_vm3  ;;  %v277_v19 = vsel %vm273_vm4, 1, %v1141_v0  ;;  %v334_v22 = vsel %vm330_vm7, 1, %v1141_v0  ;;  %vm1664_vm12 = vcmp.eq.s32.totalorder %v1348_v11, 1  ;;  %vm1665_vm13 = vcmp.eq.s32.totalorder %v1351_v13, 1 }
  0x41   : > { %351 = vrot.lane.b32.xlu0 %v1308_v2, %s1143_s14  ;;  %v276_v18 = vsel %vm274_vm5, 1, %v1141_v0  ;;  %vm331_vm8 = vmand %vm246_vm2, %vm329_vm6  ;;  %v285_v21 = vrot.slane %v277_v19, %v1342_v7  ;;  %v342_v31 = vrot.slane %v334_v22, %v1342_v7  ;;  %v398_v56 = vsel %vm272_vm3, 1, %v1141_v0 }
  0x42   : > { %v281_v20 = vrot.slane %v276_v18, %v1342_v7  ;;  %v333_v25 = vsel %vm331_vm8, 1, %v1141_v0  ;;  %v403_v62 = vrot.slane %v398_v56, %v1342_v7  ;;  %vm443_vm3 = vmand %vm1668_vm1, %vm330_vm7  ;;  %v444_v8 = vsel %vm329_vm6, 1, %v1141_v0 }
  0x43   : > { %vm1400_vm15 = vcmp.eq.s32.totalorder %v285_v21, 1  ;;  %v338_v35 = vrot.slane %v333_v25, %v1342_v7  ;;  %vm1427_vm8 = vcmp.eq.s32.totalorder %v342_v31, 1  ;;  %vm1670_vm7 = vcmp.lt.s32.totalorder %v1345_v10, 113 }
  0x44   : > { %315 = vrot.lane.b32.xlu1 %v1308_v2, %s1145_s16  ;;  %vm1396_vm14 = vcmp.eq.s32.totalorder %v281_v20, 1 }
  0x45   : > { %313 = vrot.lane.b32.xlu0 %v1299_v1, %s1145_s16  ;;  %vm1423_vm5 = vcmp.eq.s32.totalorder %v338_v35, 1 }
  0x48   : > { %372 = vrot.lane.b32.xlu1 %v1308_v2, %s1146_s25 }
  0x49   : > { %370 = vrot.lane.b32.xlu0 %v1299_v1, %s1146_s25 }
  0x4c   : > { %416 = vrot.lane.b32.xlu1 %v1308_v2, %s1147_s26 }
  0x4d   : > { %414 = vrot.lane.b32.xlu0 %v1299_v1, %s1147_s26 }
  0x50   : > { %391 = vrot.lane.b32.xlu1 %v1308_v2, %s1148_s28 }
  0x51   : > { %389 = vrot.lane.b32.xlu0 %v1299_v1, %s1148_s28 }
  0x54   : > { %437 = vrot.lane.b32.xlu1 %v1308_v2, %s1149_s8 }
  0x55   : > { %435 = vrot.lane.b32.xlu0 %v1299_v1, %s1149_s8 }
  0xaa   : > { %v293_v16 = vpop.permute.xlu1 %292 }
  0xab   : > { %v350_v17 = vpop.permute.xlu0 %349 }
  0xae   : > { %v295_v24 = vpop.permute.xlu1 %294 }
  0xaf   : > { %v257_v23 = vpop.permute.xlu0 %256  ;;  %v297_v27 = vsel %vm296_vm9, %v293_v16, %v295_v24  ;;  %v298_v28 = vsel %vm296_vm9, %v295_v24, %v293_v16  ;;  %v445_v16 = vsel %vm443_vm3, 1, %v1141_v0  ;;  %vm1671_vm3 = vcmp.lt.s32.totalorder %v1345_v10, 111 }
  0xb0   : > { %v303_v29 = vsel %vm246_vm2, %v298_v28, 0.0  ;;  %v308_v30 = vrot.slane %v297_v27, 4  ;;  %v449_v27 = vrot.slane %v444_v8, %v1342_v7  ;;  %v453_v31 = vrot.slane %v445_v16, %v1342_v7 }
  0xb1   : > { %v307_v32 = vrot.slane %v303_v29, 4 }
  0xb2   : > { %312 = vst [vmem:[#allocation2 + $0x8] sm:$0xf0] %v308_v30  ;;  %v259_v36 = vpop.permute.xlu1 %258 }
  0xb3   : > { %v352_v37 = vpop.permute.xlu0 %351  ;;  %311 = vst [vmem:[#allocation2] sm:$0xf0] %v307_v32  ;;  %v261_v38 = vsel %vm260_vm10, %v257_v23, %v259_v36  ;;  %v262_v39 = vsel %vm260_vm10, %v259_v36, %v257_v23 }
  0xb4   : > { %v354_v40 = vsel %vm1666_vm11, %v350_v17, %v352_v37  ;;  %v355_v41 = vsel %vm1666_vm11, %v352_v37, %v350_v17  ;;  %v288_v42 = vsel %vm1396_vm14, %v262_v39, 0.0  ;;  %v289_v43 = vsel %vm1400_vm15, %v261_v38, 0.0 }
  0xb5   : > { %v358_v44 = vsel %vm1664_vm12, %v355_v41, 0.0  ;;  %v359_v45 = vsel %vm1665_vm13, %v354_v40, 0.0  ;;  %290 = vst [vmem:[#allocation2] sm:$0xf] %v288_v42  ;;  %291 = vst [vmem:[#allocation2 + $0x8] sm:$0xf] %v289_v43 }
  0xb6   : > { %v362_v46 = vrot.slane %v358_v44, 4  ;;  %v363_v47 = vrot.slane %v359_v45, 4  ;;  %v316_v50 = vpop.permute.xlu1 %315  ;;  %vm397_vm12 = vmand %vm1668_vm1, %vm273_vm4  ;;  %vm374_vm13 = vcmp.lt.s32.totalorder %v1345_v10, 127  ;;  %vm1667_vm4 = vcmp.eq.s32.totalorder %v1356_v14, 1 }
  0xb7   : > { %v314_v51 = vpop.permute.xlu0 %313  ;;  %vm1673_vm11 = vcmp.eq.s32.totalorder %v1358_v15, 1  ;;  %v399_v57 = vsel %vm397_vm12, 1, %v1141_v0  ;;  %vm1669_vm12 = vcmp.lt.s32.totalorder %v1345_v10, 112 }
  0xb8   : > { %366 = vst [vmem:[#allocation2 + $0x10] sm:$0xf0] %v362_v46  ;;  %367 = vst [vmem:[#allocation2 + $0x18] sm:$0xf0] %v363_v47  ;;  %v318_v52 = vsel %vm317_vm0, %v314_v51, %v316_v50  ;;  %v319_v53 = vsel %vm317_vm0, %v316_v50, %v314_v51  ;;  %v407_v4 = vrot.slane %v399_v57, %v1342_v7  ;;  %v460_v57 = vld [vmem:[%s1658_s1] sm:$0xff] }
  0xb9   : > { %v345_v54 = vsel %vm1423_vm5, %v319_v53, 0.0  ;;  %v346_v55 = vsel %vm1427_vm8, %v318_v52, 0.0 }
  0xba   : > { %347 = vst [vmem:[#allocation2 + $0x10] sm:$0xf] %v345_v54  ;;  %348 = vst [vmem:[#allocation2 + $0x18] sm:$0xf] %v346_v55  ;;  %v373_v58 = vpop.permute.xlu1 %372  ;;  %vm1480_vm6 = vcmp.eq.s32.totalorder %v407_v4, 1 }
  0xbb   : > { %v371_v59 = vpop.permute.xlu0 %370 }
  0xbc   : > { %v375_v60 = vsel %vm374_vm13, %v371_v59, %v373_v58  ;;  %v376_v61 = vsel %vm374_vm13, %v373_v58, %v371_v59  ;;  %v462_v20 = vld [vmem:[#allocation2 + $0x8] sm:$0xff]  ;;  %v461_v24 = vld [vmem:[#allocation2] sm:$0xff] }
  0xbd   : > { %v379_v63 = vsel %vm1667_vm4, %v375_v60, 0.0  ;;  %v380_v3 = vsel %vm1673_vm11, %v376_v61, 0.0  ;;  %vm1474_vm4 = vcmp.eq.s32.totalorder %v403_v62, 1  ;;  %vm924_vm11 = vmpackc.low %vm246_vm2, %vm1396_vm14  ;;  %vm1699_vm2 = vcmp.eq.s32.totalorder %v1351_v13, 1 }
  0xbe   : > { %v383_v5 = vrot.slane %v379_v63, 4  ;;  %v384_v6 = vrot.slane %v380_v3, 4  ;;  %v417_v9 = vpop.permute.xlu1 %416  ;;  %v252_v3 = vld [vmem:[%s1660_s3] sm:$0xff]  ;;  %vm1700_vm14 = vcmp.eq.s32.totalorder %v1348_v11, 1 }
  0xbf   : > { %v415_v12 = vpop.permute.xlu0 %414 }
  0xc0   : > { %387 = vst [vmem:[#allocation2 + $0x20] sm:$0xf0] %v383_v5  ;;  %388 = vst [vmem:[#allocation2 + $0x28] sm:$0xf0] %v384_v6  ;;  %v419_v17 = vsel %vm1669_vm12, %v415_v12, %v417_v9  ;;  %v420_v18 = vsel %vm1669_vm12, %v417_v9, %v415_v12  ;;  %vm1499_vm12 = vcmp.eq.s32.totalorder %v453_v31, 1 }
  0xc1   : > { %v426_v21 = vsel %vm1668_vm1, %v420_v18, 0.0  ;;  %v429_v22 = vrot.slane %v419_v17, 4  ;;  %v464_v23 = vld [vmem:[#allocation2 + $0x18] sm:$0xff]  ;;  %v463_v25 = vld [vmem:[#allocation2 + $0x10] sm:$0xff]  ;;  %vm1495_vm1 = vcmp.eq.s32.totalorder %v449_v27, 1 }
  0xc2   : > { %v430_v28 = vrot.slane %v426_v21, 4  ;;  %v912_v29 = vpack.c.bf16 %v464_v23, %v462_v20  ;;  %v914_v30 = vpack.c.bf16 %v463_v25, %v461_v24  ;;  %v392_v32 = vpop.permute.xlu1 %391 }
  0xc3   : > { %433 = vst [vmem:[#allocation2 + $0x30] sm:$0xf0] %v429_v22  ;;  %v390_v35 = vpop.permute.xlu0 %389 }
  0xc4   : > { %434 = vst [vmem:[#allocation2 + $0x38] sm:$0xf0] %v430_v28  ;;  %v394_v36 = vsel %vm1670_vm7, %v390_v35, %v392_v32  ;;  %v395_v37 = vsel %vm1670_vm7, %v392_v32, %v390_v35  ;;  %913 = vmatprep.subr.bf16.mxu0 %v912_v29  ;;  %vm1672_vm7 = vcmask 1043456  }
  0xc5   : > { %v410_v38 = vsel %vm1474_vm4, %v394_v36, 0.0  ;;  %v411_v39 = vsel %vm1480_vm6, %v395_v37, 0.0  ;;  %915 = vmatpush1.bf16.msra.mxu0 %v914_v30 }
  0xc6   : > { %412 = vst [vmem:[#allocation2 + $0x30] sm:$0xf] %v410_v38  ;;  %413 = vst [vmem:[#allocation2 + $0x38] sm:$0xf] %v411_v39  ;;  %v438_v41 = vpop.permute.xlu1 %437 }
  0xc7   : > { %v436_v42 = vpop.permute.xlu0 %435  ;;  %v466_v47 = vld [vmem:[#allocation2 + $0x28] sm:$0xff]  ;;  %v465_v51 = vld [vmem:[#allocation2 + $0x20] sm:$0xff] }
  0xc8   : > { %v440_v43 = vsel %vm1671_vm3, %v436_v42, %v438_v41  ;;  %v441_v44 = vsel %vm1671_vm3, %v438_v41, %v436_v42  ;;  %vm471_vm3 = vcmask 293888  }
  0xc9   : > { %v456_v45 = vsel %vm1495_vm1, %v440_v43, 0.0  ;;  %v457_v46 = vsel %vm1499_vm12, %v441_v44, 0.0 }
  0xca   : > { %458 = vst [vmem:[#allocation2 + $0x40] sm:$0xf] %v456_v45  ;;  %459 = vst [vmem:[#allocation2 + $0x48] sm:$0xf] %v457_v46 }
  0xcd   : > { %v468_v50 = vld [vmem:[#allocation2 + $0x38] sm:$0xff]  ;;  %v467_v52 = vld [vmem:[#allocation2 + $0x30] sm:$0xff] }
  0xce   : > { %v916_v53 = vpack.c.bf16 %v468_v50, %v466_v47  ;;  %v918_v54 = vpack.c.bf16 %v467_v52, %v465_v51 }
  0xd0   : > { %917 = vmatprep.subr.bf16.mxu0 %v916_v53 }
  0xd1   : > { %919 = vmatpush1.bf16.msra.mxu0 %v918_v54  ;;  %v470_v55 = vld [vmem:[#allocation2 + $0x48] sm:$0xf]  ;;  %v469_v56 = vld [vmem:[#allocation2 + $0x40] sm:$0xf] }
  0xd2   : > { %887 = vmatprep.subr.msk.mxu0 %vm1672_vm7, %v470_v55 }
  0xd5   : > { %888 = vmatpush1.msk.msra.mxu0 %vm1672_vm7, %v469_v56 }
  0xd6   : > { %889 = vmatmul.mubr.msk.f32.vlgmr.msra.gmra.mrb[0].mxu0 %vm471_vm3, %v460_v57 }
 0x1a9   : > { %v548_v58 = vpop.f32.mrb[0].mxu0 }
 0x1aa   : > { %v550_v59 = vpop.f32.mrb[1].mxu0  ;;  %v556_v60 = vmul.f32 %v548_v58, %v548_v58 }
 0x1ab   : > { %v557_v61 = vmul.f32 %v550_v59, %v550_v59  ;;  %v553_v62 = vadd.f32 %v550_v59, %v548_v58 }
 0x1ad   : > { %554 = vadd.xlane.f32.xlu0 %v553_v62  ;;  %v558_v63 = vadd.f32 %v557_v61, %v556_v60 }
 0x1af   : > { %559 = vadd.xlane.f32.xlu1 %v558_v63 }
 0x1c3   : > { %575 = vperm.xlu0 %1001, %v252_v3  }
 0x23a   : > { %v555_v4 = vpop.xlane.xlu0 %554 }
 0x23b   : > { %v561_v5 = vmul.f32 0.00390625, %v555_v4 }
 0x23c   : > { %v560_v6 = vpop.xlane.xlu1 %559 }
 0x23d   : > { %v562_v8 = vmul.f32 0.00390625, %v560_v6  ;;  %v563_v9 = vmul.f32 %v561_v5, %v561_v5  ;;  %v565_v17 = vsub.f32 %v548_v58, %v561_v5  ;;  %v566_v18 = vsub.f32 %v550_v59, %v561_v5 }
 0x23f   : > { %v564_v12 = vsub.f32 %v562_v8, %v563_v9 }
 0x241   : > { %v567_v16 = vadd.f32 1e-05, %v564_v12 }
 0x242   : > { %v1519_v21 = vpop.permute.xlu0 %575 }
 0x243   : > { %1038 = vrsqrt.f32 %v567_v16 }
 0x24d   : > { %v1039_v20 = vpop.eup %1038 }
 0x24e   : > { %v569_v22 = vmul.f32 %v1039_v20, %v565_v17  ;;  %v570_v23 = vmul.f32 %v1039_v20, %v566_v18 }
 0x250   : > { %vm571_vm3 = vcmp.ge.f32.partialorder %v569_v22, 0.0  ;;  %vm572_vm7 = vcmp.ge.f32.partialorder %v570_v23, 0.0  ;;  %v578_v24 = vmul.f32 %v1519_v21, %v569_v22  ;;  %v579_v25 = vmul.f32 %v1519_v21, %v570_v23 }
 0x252   : > { %v580_v27 = vsel %vm571_vm3, %v569_v22, %v578_v24  ;;  %v581_v28 = vsel %vm572_vm7, %v570_v23, %v579_v25  ;;  %vm1151_vm7 = vmmov 1  }
 0x253   : > { %654 = vrot.lane.b32.xlu0 %v580_v27, %s1149_s8  ;;  %v1002_v29 = vpack.i.bf16 %v581_v28, %v580_v27  ;;  %vm921_vm3 = vmpackc.low %vm1151_vm7, %vm1400_vm15 }
 0x254   : > { %vm930_vm15 = vmpackc.low %vm1700_vm14, %vm1423_vm5  ;;  %vm1702_vm5 = vcmp.eq.s32.totalorder %v1356_v14, 1 }
 0x255   : > { %1003 = vrot.lane.b32.xlu1 %v1002_v29, %s1144_s29  ;;  %s897_s29 = sshll.u32 %s1204_s22, 7  ;;  %s1152_s22 = smov [#allocation7]  }
 0x259   : > { %1008 = vrot.lane.b32.xlu1 %v1002_v29, %s1142_s12 }
 0x25d   : > { %1013 = vrot.lane.b32.xlu1 %v1002_v29, %s1145_s16  ;;  %s240_s16 = scalar_lea.vmem [#allocation7], %s885_s17  ;;  %s1076_s17 = sshll.u32 %s1152_s22, 4  ;;  %s1077_s17 = int_to_ptr.vmem [resolvable:$false] %s1076_s17 }
 0x25e   : > { %s1078_s10 = scalar_lea.vmem %s1077_s17, 256 }
 0x261   : > { %1018 = vrot.lane.b32.xlu1 %v1002_v29, %s1143_s14 }
 0x265   : > { %1023 = vrot.lane.b32.xlu1 %v1002_v29, %s1146_s25  ;;  %s808_s25 = sshll.u32 %s240_s16, 4  ;;  %s1615_s25 = int_to_ptr.vmem [resolvable:$true] %s808_s25 }
 0x266   : > { %s1072_s9 = scalar_lea.vmem %s1615_s25, 128  ;;  %p1079_p7 = scmp.lt.s32.totalorder %s1615_s25, %s1077_s17 }
 0x267   : > { %p1073_p6 = scmp.ne.s32.totalorder %s1615_s25, %s1072_s9  ;;  %p1080_p10 = scmp.lt.s32.totalorder %s1078_s10, %s1072_s9 }
 0x269   : > { %1028 = vrot.lane.b32.xlu1 %v1002_v29, %s1148_s28  ;;  %p1074_p12 = pnand %p1073_p6, %p1714_p11  ;;  %p1081_p2 = por %p1080_p10, %p1079_p7 }
 0x26b   : > { %p1075_p13 = pneg %p1074_p12 }
 0x26d   : > { %1033 = vrot.lane.b32.xlu1 %v1002_v29, %s1147_s26  ;;  %p1082_p4 = pnand %p1081_p2, %p1075_p13 }
 0x271   : > { %656 = vrot.lane.b32.xlu1 %v581_v28, %s1149_s8  ;;  %s1613_s8 = scalar_lea.hbm %s1662_s5, %s897_s29 }
 0x2c5   : > { %v655_v16 = vpop.permute.xlu0 %654 }
 0x2c7   : > { %v1004_v30 = vpop.permute.xlu1 %1003 }
 0x2c8   : > { %v1006_v31 = vunpack.i.h.bf16 %v1004_v30  ;;  %v1005_v32 = vunpack.i.l.bf16 %v1004_v30 }
 0x2ca   : > { %v586_v38 = vsel %vm260_vm10, %v1005_v32, %v1006_v31  ;;  %v587_v41 = vsel %vm260_vm10, %v1006_v31, %v1005_v32 }
 0x2cb   : > { %v1009_v35 = vpop.permute.xlu1 %1008 }
 0x2cc   : > { %v1011_v36 = vunpack.i.h.bf16 %v1009_v35  ;;  %v1010_v37 = vunpack.i.l.bf16 %v1009_v35 }
 0x2ce   : > { %v596_v39 = vsel %vm296_vm9, %v1010_v37, %v1011_v36  ;;  %v597_v42 = vsel %vm296_vm9, %v1011_v36, %v1010_v37  ;;  %vm1697_vm9 = vcmp.lt.s32.totalorder %v1345_v10, 1 }
 0x2cf   : > { %v1014_v43 = vpop.permute.xlu1 %1013  ;;  %v920_v44 = vpack.c.bf16 %v596_v39, %v586_v38  ;;  %v923_v45 = vpack.c.bf16 %v597_v42, %v587_v41  ;;  %vm1698_vm10 = vmmov %vm1697_vm9 }
 0x2d0   : > { %v1016_v46 = vunpack.i.h.bf16 %v1014_v43  ;;  %v1015_v47 = vunpack.i.l.bf16 %v1014_v43 }
 0x2d1   : > { %922 = vmatprep.subr.msk.bf16.mxu1 %vm921_vm3, %v920_v44  ;;  %vm936_vm3 = vmpackc.low %vm1702_vm5, %vm1151_vm7 }
 0x2d2   : > { %925 = vmatpush1.bf16.msk.msra.mxu1 %vm924_vm11, %v923_v45  ;;  %v606_v52 = vsel %vm317_vm0, %v1015_v47, %v1016_v46  ;;  %v607_v53 = vsel %vm317_vm0, %v1016_v46, %v1015_v47  ;;  %vm927_vm11 = vmpackc.low %vm1699_vm2, %vm1427_vm8  ;;  %vm1701_vm0 = vcmp.eq.s32.totalorder %v1358_v15, 1 }
 0x2d3   : > { %v1019_v34 = vpop.permute.xlu1 %1018  ;;  %vm933_vm8 = vmpackc.low %vm1701_vm0, %vm1151_vm7  ;;  %vm1708_vm0 = vcmp.lt.s32.totalorder %v1345_v10, 111 }
 0x2d4   : > { %v1021_v50 = vunpack.i.h.bf16 %v1019_v34  ;;  %v1020_v51 = vunpack.i.l.bf16 %v1019_v34 }
 0x2d6   : > { %v616_v54 = vsel %vm1697_vm9, %v1020_v51, %v1021_v50  ;;  %v617_v33 = vsel %vm1698_vm10, %v1021_v50, %v1020_v51  ;;  %vm1705_vm10 = vcmp.lt.s32.totalorder %v1345_v10, 112 }
 0x2d7   : > { %v926_v55 = vpack.c.bf16 %v616_v54, %v606_v52  ;;  %v929_v56 = vpack.c.bf16 %v617_v33, %v607_v53  ;;  %v1024_v57 = vpop.permute.xlu1 %1023  ;;  %vm1706_vm2 = vmmov %vm1705_vm10 }
 0x2d8   : > { %v1026_v58 = vunpack.i.h.bf16 %v1024_v57  ;;  %v1025_v59 = vunpack.i.l.bf16 %v1024_v57 }
 0x2d9   : > { %928 = vmatprep.subr.msk.bf16.mxu1 %vm927_vm11, %v926_v55  ;;  %vm1707_vm11 = vcmp.lt.s32.totalorder %v1384_v26, 240  ;;  %v664_v26 = vld [vmem:[%s1659_s2] sm:$0xf] }
 0x2da   : > { %v628_v60 = vsel %vm374_vm13, %v1025_v59, %v1026_v58  ;;  %v629_v49 = vsel %vm374_vm13, %v1026_v58, %v1025_v59  ;;  %931 = vmatpush1.bf16.msk.msra.mxu1 %vm930_vm15, %v929_v56  ;;  %vm1703_vm13 = vcmp.lt.s32.totalorder %v1345_v10, 113  ;;  %vm939_vm14 = vmpackc.low %vm1707_vm11, %vm1480_vm6  ;;  %vm683_vm6 = vcmask 588800  }
 0x2db   : > { %v932_v13 = vpack.c.bf16 %v629_v49, %v581_v28  ;;  %v935_v61 = vpack.c.bf16 %v628_v60, %v580_v27  ;;  %v1029_v48 = vpop.permute.xlu1 %1028  ;;  %vm1704_vm9 = vmmov %vm1703_vm13 }
 0x2dc   : > { %v1031_v11 = vunpack.i.h.bf16 %v1029_v48  ;;  %v1030_v62 = vunpack.i.l.bf16 %v1029_v48  ;;  %vm942_vm15 = vmpackc.low %vm1151_vm7, %vm1474_vm4  ;;  %vm1710_vm4 = vcmask 1043456  }
 0x2dd   : > { %934 = vmatprep.subr.msk.bf16.mxu1 %vm933_vm8, %v932_v13  ;;  %vm1709_vm8 = vmmov %vm1708_vm0 }
 0x2de   : > { %937 = vmatpush1.bf16.msk.msra.mxu1 %vm936_vm3, %v935_v61  ;;  %v638_v5 = vsel %vm1703_vm13, %v1030_v62, %v1031_v11  ;;  %v639_v15 = vsel %vm1704_vm9, %v1031_v11, %v1030_v62  ;;  %vm1711_vm7 = vmmov %vm1710_vm4 }
 0x2df   : > { %v1034_v63 = vpop.permute.xlu1 %1033  ;;  %vm1713_vm5 = vmmov %vm1710_vm4 }
 0x2e0   : > { %v1036_v3 = vunpack.i.h.bf16 %v1034_v63  ;;  %v1035_v4 = vunpack.i.l.bf16 %v1034_v63 }
 0x2e2   : > { %v648_v6 = vsel %vm1705_vm10, %v1035_v4, %v1036_v3  ;;  %v649_v14 = vsel %vm1706_vm2, %v1036_v3, %v1035_v4 }
 0x2e3   : > { %v938_v8 = vpack.c.bf16 %v649_v14, %v639_v15  ;;  %v941_v9 = vpack.c.bf16 %v648_v6, %v638_v5  ;;  %v657_v12 = vpop.permute.xlu1 %656 }
 0x2e4   : > { %v659_v17 = vsel %vm1708_vm0, %v657_v12, %v655_v16  ;;  %v658_v0 = vsel %vm1709_vm8, %v655_v16, %v657_v12 }
 0x2e5   : > { %940 = vmatprep.subr.msk.bf16.mxu1 %vm939_vm14, %v938_v8 }
 0x2e6   : > { %943 = vmatpush1.bf16.msk.msra.mxu1 %vm942_vm15, %v941_v9 }
 0x2e7   : > { %910 = vmatprep.subr.msk.mxu1 %vm1499_vm12, %v659_v17  ;;  %vm1712_vm12 = vmmov %vm1710_vm4 }
 0x2ea   : > { %911 = vmatpush1.msk.msra.mxu1 %vm1495_vm1, %v658_v0 }
 0x2eb   : > { %890 = vmatmul.mubr.msk.f32.vlgmr.msra.gmra.mrb[0].mxu1 %vm683_vm6, %v664_v26 }
 0x3be   : > { %v753_v19 = vpop.f32.mrb[0].mxu1 }
 0x3bf   : > { %v763_v18 = vmul.f32 %v753_v19, %v753_v19  ;;  %v755_v20 = vpop.f32.mrb[1].mxu1  ;;  %v758_v22 = vsel %vm1710_vm4, %v753_v19, 0.0 }
 0x3c0   : > { %v759_v40 = vsel %vm1711_vm7, %v755_v20, 0.0  ;;  %v764_v23 = vmul.f32 %v755_v20, %v755_v20 }
 0x3c1   : > { %v760_v24 = vadd.f32 %v759_v40, %v758_v22  ;;  %v765_v25 = vsel %vm1712_vm12, %v763_v18, 0.0 }
 0x3c2   : > { %v766_v27 = vsel %vm1713_vm5, %v764_v23, 0.0 }
 0x3c3   : > { %761 = vadd.xlane.f32.xlu0 %v760_v24  ;;  %v767_v10 = vadd.f32 %v766_v27, %v765_v25 }
 0x3c5   : > { %768 = vadd.xlane.f32.xlu1 %v767_v10 }
 0x450   : > { %v762_v28 = vpop.xlane.xlu0 %761 }
 0x451   : > { %v770_v7 = vmul.f32 0.00390625, %v762_v28 }
 0x452   : > { %v769_v29 = vpop.xlane.xlu1 %768 }
 0x453   : > { %v771_v30 = vmul.f32 0.00390625, %v769_v29  ;;  %v772_v31 = vmul.f32 %v770_v7, %v770_v7  ;;  %v774_v36 = vsub.f32 %v753_v19, %v770_v7  ;;  %v775_v37 = vsub.f32 %v755_v20, %v770_v7 }
 0x455   : > { %v773_v32 = vsub.f32 %v771_v30, %v772_v31 }
 0x457   : > { %v776_v35 = vadd.f32 1e-05, %v773_v32 }
 0x459   : > { %1040 = vrsqrt.f32 %v776_v35 }
 0x463   : > { %v1041_v38 = vpop.eup %1040 }
 0x464   : > { %v778_v39 = vmul.f32 %v1041_v38, %v774_v36  ;;  %v779_v41 = vmul.f32 %v1041_v38, %v775_v37 }
 0x466   : > { %v780_v42 = vadd.f32 %v778_v39, %v1299_v1  ;;  %v781_v43 = vadd.f32 %v779_v41, %v1308_v2 }
 0x468   : > { %vm782_vm1 = vcmp.ge.f32.partialorder %v780_v42, 0.0  ;;  %vm783_vm3 = vcmp.ge.f32.partialorder %v781_v43, 0.0  ;;  %v784_v44 = vmul.f32 %v780_v42, %v1519_v21  ;;  %v785_v45 = vmul.f32 %v781_v43, %v1519_v21 }
 0x46a   : > { %v786_v46 = vsel %vm782_vm1, %v780_v42, %v784_v44  ;;  %v787_v47 = vsel %vm783_vm3, %v781_v43, %v785_v45 }
 0x46b   : > { %v790_v34 = vcombine.low %v786_v46, %v787_v47 }
 0x46d   : > { %792 = vst [vmem:[%s240_s16] sm:$0xff] %v790_v34 }
 0x46e   : > { %1085 = shalt.err (!%p1082_p4)
}
 0x46f   : > { %s1086_s13 = scalar_lea.hbm %s1613_s8, 128  ;;  %s1090_s15 = scalar_lea.hbm %s1662_s5, 256 }
 0x470   : > { %p1087_p5 = scmp.ne.s32.totalorder %s1613_s8, %s1086_s13  ;;  %p1091_p0 = scmp.lt.u32.totalorder %s1613_s8, %s1662_s5 }
 0x471   : > { %p1092_p1 = scmp.lt.u32.totalorder %s1090_s15, %s1086_s13  ;;  %p1094_p6 = scmp.lt.u32.totalorder %s1086_s13, %s1613_s8 }
 0x472   : > { %p1088_p8 = pnand %p1087_p5, %p1714_p11 }
 0x473   : > { %p1093_p3 = por %p1092_p1, %p1091_p0 }
 0x474   : > { %p1089_p9 = pneg %p1088_p8 }
 0x475   : > { %p1095_p12 = por %p1094_p6, %p1093_p3 }
 0x477   : > { %p1096_p13 = pnand %p1095_p12, %p1089_p9 }
 0x479   : > { %1099 = shalt.err (!%p1096_p13)
}
 0x47a   : > { %946 = dma.vmem_to_hbm [thread:$0]  (%p1714_p11), %s1615_s25, 128, %s1613_s8, %s794_s7  }
 0x47b PF: > { %s820_s29 = sand.u32 1, %s1126_s18   ;;  %p1715_p7 = scmp.ne.s32.totalorder %s1677_s6, 0 }
 0x47c   : > { %p1716_p10 = scmp.ge.s32.totalorder %s1138_s21, 2  ;;  %s821_s16 = scalar_lea.sflag [#allocation6], %s820_s29 }
 0x47e   : > { %p953_p2 = pnand %p1716_p10, %p1715_p7 }
 0x480   : > { %1121 = dma.done.wait (!%p953_p2), %s821_s16, 128  }
 0x481   : > { %1123 = vsyncadd (!%p953_p2), %s821_s16, 4294967168  ;;  %p18_p4 = scmp.ge.s32.totalorder %s1208_s24, 4   ;;  %s1717_s18 = smov %s1130_s19 }
 0x482   : > { %s1718_s19 = smov %s1134_s20  ;;  %s1719_s20 = smov %s1220_s27 }
 0x483   : > { %s1720_s21 = smov %s1208_s24  ;;  %20 = sbr.rel (!%p18_p4) target bundleno = 5 (0x5), region = 85 }
 0x48a   :  { %826 = vsyncpa [#allocation5], 1 }
 0x48b   :  { %828 = vsyncpa [#allocation5 + $0x1], 1 }
 0x48c   :  { %829 = vsyncpa [#allocation6], 1 }
 0x48d   :  { %831 = vsyncpa [#allocation6 + $0x1], 1 }

</bundles_post_ra>
